<compile_context>
chip_gen: v7x
topology: tpu7x:2x2x1
jax: 0.10.0
libtpu: 0.0.40
codegen_flags: <defaults>
</compile_context>

<pallas_src>
import functools

import jax
import jax.numpy as jnp
from jax.experimental import pallas as pl
from jax.experimental.pallas import tpu as pltpu

MAXVAL = 100.0                       # default maxval of get_time_embedding
VMEM_BUDGET = 48 * 1024 * 1024       # conservative usable budget (v7x: 64 MiB physical)


# ---------------------------------------------------------------------------
# Kernel: per batch row, write time-emb to row 0 and gather S table rows into
# rows 1..S of the final output block.
# ---------------------------------------------------------------------------
def _embed_kernel(ids_ref, temb_ref, table_ref, out_ref, *, S, V):
    b = pl.program_id(0)

    # Row 0: precomputed sinusoidal time embedding (tiny (1,1,D) input).
    out_ref[0:1, 0:1, :] = temb_ref[...]

    # Rows 1..S: embedding-table row gather from the VMEM-resident table.
    # Statically unrolled (S is a compile-time shape), so every store offset is
    # static; only the gather index is dynamic.  The id clamp runs on the
    # scalar core (nn.Embedding would raise on out-of-range ids; we clamp so a
    # bad id can never read out of bounds in VMEM).
    # TODO(synk): for very long sequences, switch to a fori_loop over token
    # tiles to bound code size / live ranges.
    for s in range(S):
        idx = jnp.clip(ids_ref[b, s], 0, V - 1)
        out_ref[0, s + 1:s + 2, :] = table_ref[pl.ds(idx, 1), :]


# ---------------------------------------------------------------------------
# Wrapper: full forward pass.
# ---------------------------------------------------------------------------
def jepa_dit_embedder_discrete(x_ids, t, condition, emb_table, cond_weight):
    """x_ids: (B,S) int, t: (B,) f32, condition: (B,C) f32 or None,
    emb_table: (V,D) f32, cond_weight: (C,D) f32 (= nn.Linear.weight.T)."""
    B, S = x_ids.shape
    V, D = emb_table.shape
    assert D % 2 == 0, "d_model must be even for the sin/cos time embedding"

    table = emb_table.astype(jnp.float32)
    ids = x_ids.astype(jnp.int32)

    # --- tiny ops in plain jnp (XLA fuses; a pallas_call here only adds
    #     launch overhead and the matmul would badly underfill the MXU) -------
    tt = t.astype(jnp.float32)[:, None]                                    # (B, 1)
    inv_freq = 1.0 / (MAXVAL ** (jnp.arange(0, D, 2, dtype=jnp.float32) / D))
    ang = tt * inv_freq                                                    # (B, D/2)
    t_emb = jnp.concatenate([jnp.sin(ang), jnp.cos(ang)], axis=-1)         # (B, D)
    t_emb3 = t_emb[:, None, :]                                             # (B, 1, D)

    # --- VMEM budget gate: the table is kept fully VMEM-resident ------------
    table_bytes = V * D * 4
    block_bytes = (S + 1) * D * 4 + D * 4
    needed = 2 * (table_bytes + block_bytes) + (1 << 20)                   # 2x: double buffers
    if needed > VMEM_BUDGET:
        # TODO(synk): tiled HBM-gather fallback (memory_space=pl.ANY + manual
        # pltpu.make_async_copy row DMAs, T tokens per step, double-buffered)
        # for embedding tables that do not fit in VMEM.
        raise NotImplementedError("embedding table too large for VMEM-resident gather")

    grid_spec = pltpu.PrefetchScalarGridSpec(
        num_scalar_prefetch=1,                      # ids land in SMEM, read in-kernel
        grid=(B,),
        in_specs=[
            pl.BlockSpec((1, 1, D), lambda b, ids: (b, 0, 0)),   # time-emb row
            pl.BlockSpec((V, D), lambda b, ids: (0, 0)),         # full table, VMEM-resident
        ],
        out_specs=pl.BlockSpec((1, S + 1, D), lambda b, ids: (b, 0, 0)),
    )
    emb = pl.pallas_call(
        functools.partial(_embed_kernel, S=S, V=V),
        grid_spec=grid_spec,
        out_shape=jax.ShapeDtypeStruct((B, S + 1, D), jnp.float32),
        compiler_params=pltpu.CompilerParams(
            # TODO(synk): use pltpu.CORE_PARALLEL here on v7x (2 TensorCores);
            # plain "parallel" is a safe no-op on v5e/v6e.
            dimension_semantics=("parallel",),
            vmem_limit_bytes=max(needed, 4 << 20),
        ),
    )(ids, t_emb3, table)

    cond_out = None
    if condition is not None:
        cond_out = condition.astype(jnp.float32) @ cond_weight.astype(jnp.float32)
    return emb, cond_out


# ---------------------------------------------------------------------------
# Plain-JAX reference (replicates the PyTorch forward) for verification.
# ---------------------------------------------------------------------------
def _reference(x_ids, t, condition, emb_table, cond_weight):
    D = emb_table.shape[1]
    x_emb = emb_table[x_ids]                                               # (B, S, D)
    tt = t.astype(jnp.float32)[:, None]                                    # (B, 1)
    inv_freq = 1.0 / (MAXVAL ** (jnp.arange(0, D, 2, dtype=jnp.float32) / D))
    ang = tt * inv_freq                                                    # (B, D/2)
    t_emb = jnp.concatenate([jnp.sin(ang), jnp.cos(ang)], -1)[:, None, :]
    emb = jnp.concatenate([t_emb, x_emb], axis=1)
    cond = None if condition is None else condition @ cond_weight
    return emb, cond


if __name__ == "__main__":
    # Small shapes consistent with the module: B=2 sequences of S=8 tokens,
    # d_model=32, vocab_size=16, condition_dim=12.
    B, S, D, V, C = 2, 8, 32, 16, 12

    key = jax.random.PRNGKey(0)
    k_tok, k_t, k_cond, k_tab, k_w = jax.random.split(key, 5)

    x_ids = jax.random.randint(k_tok, (B, S), 0, V, dtype=jnp.int32)
    t = jax.random.uniform(k_t, (B,), jnp.float32) * 50.0
    condition = jax.random.normal(k_cond, (B, C), jnp.float32)

    # Deterministic synthetic parameters (no checkpoint load).
    emb_table = jax.random.normal(k_tab, (V, D), jnp.float32) * 0.02
    cond_weight = jax.random.normal(k_w, (C, D), jnp.float32) * 0.02

    emb, cond_out = jepa_dit_embedder_discrete(x_ids, t, condition,
                                               emb_table, cond_weight)
    jax.block_until_ready((emb, cond_out))

    ref_emb, ref_cond = _reference(x_ids, t, condition, emb_table, cond_weight)
    assert emb.shape == (B, S + 1, D) and cond_out.shape == (B, D)
    assert jnp.allclose(emb, ref_emb, atol=1e-5, rtol=1e-5)
    assert jnp.allclose(cond_out, ref_cond, atol=1e-5, rtol=1e-5)

    print("KERNEL_OK")
</pallas_src>

<mosaic_0001>
module attributes {stable_mosaic.version = 11 : i64} {
  func.func @_embed_kernel(%arg0: i32, %arg1: memref<2x8xi32, #tpu.memory_space<smem>>, %arg2: memref<1x1x32xf32, #tpu.memory_space<vmem>>, %arg3: memref<16x32xf32, #tpu.memory_space<vmem>>, %arg4: memref<1x9x32xf32, #tpu.memory_space<vmem>>) attributes {dimension_semantics = [#tpu.dimension_semantics<parallel>], iteration_bounds = array<i64: 2>, scalar_prefetch = 1 : i64, scratch_operands = 0 : i64, tpu.core_type = #tpu.core_type<tc>, window_params = [{transform_indices = @transform_0, window_bounds = array<i64: 1, 1, 32>}, {pipeline_mode = #tpu.pipeline_mode<synchronous>, transform_indices = @transform_1, window_bounds = array<i64: 16, 32>}, {transform_indices = @transform_2, window_bounds = array<i64: 1, 9, 32>}]} {
    %c0 = arith.constant 0 : index
    %c0_0 = arith.constant 0 : index
    %c0_1 = arith.constant 0 : index
    %0 = vector.load %arg2[%c0, %c0_0, %c0_1] : memref<1x1x32xf32, #tpu.memory_space<vmem>>, vector<1x1x32xf32>
    %c0_2 = arith.constant 0 : index
    %c0_3 = arith.constant 0 : index
    %c0_4 = arith.constant 0 : index
    %1 = vector.load %arg4[%c0_2, %c0_3, %c0_4] : memref<1x9x32xf32, #tpu.memory_space<vmem>>, vector<1x1x32xf32>
    tpu.vector_store %arg4[%c0_2, %c0_3, %c0_4], %0 {strides = array<i32>} : memref<1x9x32xf32, #tpu.memory_space<vmem>>, vector<1x1x32xf32>,
    %2 = arith.index_cast %arg0 : i32 to index
    %c0_5 = arith.constant 0 : index
    %3 = memref.load %arg1[%2, %c0_5] : memref<2x8xi32, #tpu.memory_space<smem>>
    %c0_i32 = arith.constant 0 : i32
    %c15_i32 = arith.constant 15 : i32
    %4 = arith.maxsi %c0_i32, %3 : i32
    %5 = arith.minsi %c15_i32, %4 : i32
    %6 = arith.index_cast %5 : i32 to index
    %c0_6 = arith.constant 0 : index
    %7 = vector.load %arg3[%6, %c0_6] : memref<16x32xf32, #tpu.memory_space<vmem>>, vector<1x32xf32>
    %c0_7 = arith.constant 0 : index
    %c1 = arith.constant 1 : index
    %c0_8 = arith.constant 0 : index
    %8 = vector.load %arg4[%c0_7, %c1, %c0_8] : memref<1x9x32xf32, #tpu.memory_space<vmem>>, vector<1x1x32xf32>
    %9 = vector.shape_cast %8 : vector<1x1x32xf32> to vector<1x32xf32>
    %10 = vector.shape_cast %7 : vector<1x32xf32> to vector<1x1x32xf32>
    tpu.vector_store %arg4[%c0_7, %c1, %c0_8], %10 {strides = array<i32>} : memref<1x9x32xf32, #tpu.memory_space<vmem>>, vector<1x1x32xf32>,
    %11 = arith.index_cast %arg0 : i32 to index
    %c1_9 = arith.constant 1 : index
    %12 = memref.load %arg1[%11, %c1_9] : memref<2x8xi32, #tpu.memory_space<smem>>
    %c0_i32_10 = arith.constant 0 : i32
    %c15_i32_11 = arith.constant 15 : i32
    %13 = arith.maxsi %c0_i32_10, %12 : i32
    %14 = arith.minsi %c15_i32_11, %13 : i32
    %15 = arith.index_cast %14 : i32 to index
    %c0_12 = arith.constant 0 : index
    %16 = vector.load %arg3[%15, %c0_12] : memref<16x32xf32, #tpu.memory_space<vmem>>, vector<1x32xf32>
    %c0_13 = arith.constant 0 : index
    %c2 = arith.constant 2 : index
    %c0_14 = arith.constant 0 : index
    %17 = vector.load %arg4[%c0_13, %c2, %c0_14] : memref<1x9x32xf32, #tpu.memory_space<vmem>>, vector<1x1x32xf32>
    %18 = vector.shape_cast %17 : vector<1x1x32xf32> to vector<1x32xf32>
    %19 = vector.shape_cast %16 : vector<1x32xf32> to vector<1x1x32xf32>
    tpu.vector_store %arg4[%c0_13, %c2, %c0_14], %19 {strides = array<i32>} : memref<1x9x32xf32, #tpu.memory_space<vmem>>, vector<1x1x32xf32>,
    %20 = arith.index_cast %arg0 : i32 to index
    %c2_15 = arith.constant 2 : index
    %21 = memref.load %arg1[%20, %c2_15] : memref<2x8xi32, #tpu.memory_space<smem>>
    %c0_i32_16 = arith.constant 0 : i32
    %c15_i32_17 = arith.constant 15 : i32
    %22 = arith.maxsi %c0_i32_16, %21 : i32
    %23 = arith.minsi %c15_i32_17, %22 : i32
    %24 = arith.index_cast %23 : i32 to index
    %c0_18 = arith.constant 0 : index
    %25 = vector.load %arg3[%24, %c0_18] : memref<16x32xf32, #tpu.memory_space<vmem>>, vector<1x32xf32>
    %c0_19 = arith.constant 0 : index
    %c3 = arith.constant 3 : index
    %c0_20 = arith.constant 0 : index
    %26 = vector.load %arg4[%c0_19, %c3, %c0_20] : memref<1x9x32xf32, #tpu.memory_space<vmem>>, vector<1x1x32xf32>
    %27 = vector.shape_cast %26 : vector<1x1x32xf32> to vector<1x32xf32>
    %28 = vector.shape_cast %25 : vector<1x32xf32> to vector<1x1x32xf32>
    tpu.vector_store %arg4[%c0_19, %c3, %c0_20], %28 {strides = array<i32>} : memref<1x9x32xf32, #tpu.memory_space<vmem>>, vector<1x1x32xf32>,
    %29 = arith.index_cast %arg0 : i32 to index
    %c3_21 = arith.constant 3 : index
    %30 = memref.load %arg1[%29, %c3_21] : memref<2x8xi32, #tpu.memory_space<smem>>
    %c0_i32_22 = arith.constant 0 : i32
    %c15_i32_23 = arith.constant 15 : i32
    %31 = arith.maxsi %c0_i32_22, %30 : i32
    %32 = arith.minsi %c15_i32_23, %31 : i32
    %33 = arith.index_cast %32 : i32 to index
    %c0_24 = arith.constant 0 : index
    %34 = vector.load %arg3[%33, %c0_24] : memref<16x32xf32, #tpu.memory_space<vmem>>, vector<1x32xf32>
    %c0_25 = arith.constant 0 : index
    %c4 = arith.constant 4 : index
    %c0_26 = arith.constant 0 : index
    %35 = vector.load %arg4[%c0_25, %c4, %c0_26] : memref<1x9x32xf32, #tpu.memory_space<vmem>>, vector<1x1x32xf32>
    %36 = vector.shape_cast %35 : vector<1x1x32xf32> to vector<1x32xf32>
    %37 = vector.shape_cast %34 : vector<1x32xf32> to vector<1x1x32xf32>
    tpu.vector_store %arg4[%c0_25, %c4, %c0_26], %37 {strides = array<i32>} : memref<1x9x32xf32, #tpu.memory_space<vmem>>, vector<1x1x32xf32>,
    %38 = arith.index_cast %arg0 : i32 to index
    %c4_27 = arith.constant 4 : index
    %39 = memref.load %arg1[%38, %c4_27] : memref<2x8xi32, #tpu.memory_space<smem>>
    %c0_i32_28 = arith.constant 0 : i32
    %c15_i32_29 = arith.constant 15 : i32
    %40 = arith.maxsi %c0_i32_28, %39 : i32
    %41 = arith.minsi %c15_i32_29, %40 : i32
    %42 = arith.index_cast %41 : i32 to index
    %c0_30 = arith.constant 0 : index
    %43 = vector.load %arg3[%42, %c0_30] : memref<16x32xf32, #tpu.memory_space<vmem>>, vector<1x32xf32>
    %c0_31 = arith.constant 0 : index
    %c5 = arith.constant 5 : index
    %c0_32 = arith.constant 0 : index
    %44 = vector.load %arg4[%c0_31, %c5, %c0_32] : memref<1x9x32xf32, #tpu.memory_space<vmem>>, vector<1x1x32xf32>
    %45 = vector.shape_cast %44 : vector<1x1x32xf32> to vector<1x32xf32>
    %46 = vector.shape_cast %43 : vector<1x32xf32> to vector<1x1x32xf32>
    tpu.vector_store %arg4[%c0_31, %c5, %c0_32], %46 {strides = array<i32>} : memref<1x9x32xf32, #tpu.memory_space<vmem>>, vector<1x1x32xf32>,
    %47 = arith.index_cast %arg0 : i32 to index
    %c5_33 = arith.constant 5 : index
    %48 = memref.load %arg1[%47, %c5_33] : memref<2x8xi32, #tpu.memory_space<smem>>
    %c0_i32_34 = arith.constant 0 : i32
    %c15_i32_35 = arith.constant 15 : i32
    %49 = arith.maxsi %c0_i32_34, %48 : i32
    %50 = arith.minsi %c15_i32_35, %49 : i32
    %51 = arith.index_cast %50 : i32 to index
    %c0_36 = arith.constant 0 : index
    %52 = vector.load %arg3[%51, %c0_36] : memref<16x32xf32, #tpu.memory_space<vmem>>, vector<1x32xf32>
    %c0_37 = arith.constant 0 : index
    %c6 = arith.constant 6 : index
    %c0_38 = arith.constant 0 : index
    %53 = vector.load %arg4[%c0_37, %c6, %c0_38] : memref<1x9x32xf32, #tpu.memory_space<vmem>>, vector<1x1x32xf32>
    %54 = vector.shape_cast %53 : vector<1x1x32xf32> to vector<1x32xf32>
    %55 = vector.shape_cast %52 : vector<1x32xf32> to vector<1x1x32xf32>
    tpu.vector_store %arg4[%c0_37, %c6, %c0_38], %55 {strides = array<i32>} : memref<1x9x32xf32, #tpu.memory_space<vmem>>, vector<1x1x32xf32>,
    %56 = arith.index_cast %arg0 : i32 to index
    %c6_39 = arith.constant 6 : index
    %57 = memref.load %arg1[%56, %c6_39] : memref<2x8xi32, #tpu.memory_space<smem>>
    %c0_i32_40 = arith.constant 0 : i32
    %c15_i32_41 = arith.constant 15 : i32
    %58 = arith.maxsi %c0_i32_40, %57 : i32
    %59 = arith.minsi %c15_i32_41, %58 : i32
    %60 = arith.index_cast %59 : i32 to index
    %c0_42 = arith.constant 0 : index
    %61 = vector.load %arg3[%60, %c0_42] : memref<16x32xf32, #tpu.memory_space<vmem>>, vector<1x32xf32>
    %c0_43 = arith.constant 0 : index
    %c7 = arith.constant 7 : index
    %c0_44 = arith.constant 0 : index
    %62 = vector.load %arg4[%c0_43, %c7, %c0_44] : memref<1x9x32xf32, #tpu.memory_space<vmem>>, vector<1x1x32xf32>
    %63 = vector.shape_cast %62 : vector<1x1x32xf32> to vector<1x32xf32>
    %64 = vector.shape_cast %61 : vector<1x32xf32> to vector<1x1x32xf32>
    tpu.vector_store %arg4[%c0_43, %c7, %c0_44], %64 {strides = array<i32>} : memref<1x9x32xf32, #tpu.memory_space<vmem>>, vector<1x1x32xf32>,
    %65 = arith.index_cast %arg0 : i32 to index
    %c7_45 = arith.constant 7 : index
    %66 = memref.load %arg1[%65, %c7_45] : memref<2x8xi32, #tpu.memory_space<smem>>
    %c0_i32_46 = arith.constant 0 : i32
    %c15_i32_47 = arith.constant 15 : i32
    %67 = arith.maxsi %c0_i32_46, %66 : i32
    %68 = arith.minsi %c15_i32_47, %67 : i32
    %69 = arith.index_cast %68 : i32 to index
    %c0_48 = arith.constant 0 : index
    %70 = vector.load %arg3[%69, %c0_48] : memref<16x32xf32, #tpu.memory_space<vmem>>, vector<1x32xf32>
    %c0_49 = arith.constant 0 : index
    %c8 = arith.constant 8 : index
    %c0_50 = arith.constant 0 : index
    %71 = vector.load %arg4[%c0_49, %c8, %c0_50] : memref<1x9x32xf32, #tpu.memory_space<vmem>>, vector<1x1x32xf32>
    %72 = vector.shape_cast %71 : vector<1x1x32xf32> to vector<1x32xf32>
    %73 = vector.shape_cast %70 : vector<1x32xf32> to vector<1x1x32xf32>
    tpu.vector_store %arg4[%c0_49, %c8, %c0_50], %73 {strides = array<i32>} : memref<1x9x32xf32, #tpu.memory_space<vmem>>, vector<1x1x32xf32>,
    return
  }
  func.func @transform_0(%arg0: i32, %arg1: memref<2x8xi32, #tpu.memory_space<smem>>) -> (i32, i32, i32) {
    %c0_i32 = arith.constant 0 : i32
    %c0_i32_0 = arith.constant 0 : i32
    %c0_i32_1 = arith.constant 0 : i32
    return %arg0, %c0_i32, %c0_i32_0 : i32, i32, i32
  }
  func.func @transform_1(%arg0: i32, %arg1: memref<2x8xi32, #tpu.memory_space<smem>>) -> (i32, i32) {
    %c0_i32 = arith.constant 0 : i32
    %c0_i32_0 = arith.constant 0 : i32
    %c0_i32_1 = arith.constant 0 : i32
    return %c0_i32, %c0_i32_0 : i32, i32
  }
  func.func @transform_2(%arg0: i32, %arg1: memref<2x8xi32, #tpu.memory_space<smem>>) -> (i32, i32, i32) {
    %c0_i32 = arith.constant 0 : i32
    %c0_i32_0 = arith.constant 0 : i32
    %c0_i32_1 = arith.constant 0 : i32
    return %arg0, %c0_i32, %c0_i32_0 : i32, i32, i32
  }
}

</mosaic_0001>

<bundles_post_ra>
// kernel: tpu_custom_call.1
= control target key start
LH: loop header
LB: loop body
LE: loop exit
PB: predicated region body
PF: predicated region fallthrough
CT: control target
= control target key end

     0   :  { %s576_s0 = inlined_call_operand.hbm [shape: s32[2,8], index: 0, kind: input, shape index: {}]   ;;  %s577_s1 = inlined_call_operand.vmem [shape: f32[2,1,32], index: 1, kind: input, shape index: {}]   ;;  %s578_s2 = inlined_call_operand.hbm [shape: f32[16,32], index: 2, kind: input, shape index: {}]   ;;  %s579_s3 = inlined_call_operand.vmem [shape: f32[2,9,32], index: 3, kind: output, shape index: {}]  }
   0x1   :  { %s396_s14 = scalar_lea.hbm %s576_s0, 32 }
   0x2   :  { %p397_p0 = scmp.ne.s32.totalorder %s576_s0, %s396_s14  ;;  %p400_p1 = scmp.lt.u32.totalorder %s396_s14, %s576_s0 }
   0x4   :  { %p402_p2 = pnand %p400_p1, %p397_p0 }
   0x6   :  { %405 = shalt.err (!%p402_p2)  }
   0x7   :  { %s448_s19 = smov [#allocation3]  }
   0x8   :  { %9 = dma.hbm_to_smem %s576_s0, 32, %s448_s19, [#allocation2] }
   0x9   :  { %438 = dma.done.wait [#allocation2], 32 }
   0xa   :  { %439 = vsyncadd [#allocation2], 4294967264 }
   0xb   :  { %11 = sfence }
   0xc   :  { %12 = vsyncpa [#allocation5], 0  ;;  %s484_s22 = smov 0  }
   0xd LB: > { %s490_s23 = sadd.s32 4294967295, %s446_s22   ;;  %p307_p3 = scmp.ge.s32.totalorder %s446_s22, 1  ;;  %s446_s22 = sphi %s484_s22, %s18_s22  }
   0xe   : > { %p96_p4 = scmp.lt.s32.totalorder %s446_s22, 3  ;;  %s449_s0 = smov [#allocation4]  }
   0xf   : > { %s108_s24 = sshll.u32 %s449_s0, 4  ;;  %p580_p6 = scmp.eq.s32.totalorder %s490_s23, 0  ;;  %s109_s24 = int_to_ptr.vmem [resolvable:$true] %s108_s24 }
  0x10   : > { %p494_p5 = pnand %p307_p3, %p96_p4  ;;  %s406_s29 = scalar_lea.hbm %s578_s2, 256 }
  0x11   : > { %p407_p9 = scmp.ne.s32.totalorder %s578_s2, %s406_s29  ;;  %p413_p13 = scmp.lt.u32.totalorder %s406_s29, %s578_s2 }
  0x12   : > { %s582_s25 = scalar_select %p494_p5, 1, 0 }
  0x13   : > { %p378_p7 = pneg %p494_p5 }
  0x15   : > { %p503_p8 = pnand %p580_p6, %p378_p7 }
  0x17   : > { %p408_p10 = pneg %p503_p8 }
  0x19   : > { %p409_p11 = pnand %p408_p10, %p407_p9 }
  0x1b   : > { %p410_p12 = pneg %p409_p11 }
  0x1d   : > { %p415_p0 = pnand %p413_p13, %p410_p12 }
  0x1f   : > { %418 = shalt.err (!%p415_p0)
}
  0x20   : > { %s419_s7 = scalar_lea.vmem %s109_s24, 256  ;;  %p427_p4 = scmp.lt.s32.totalorder %s109_s24, %s109_s24 }
  0x21   : > { %p420_p1 = scmp.ne.s32.totalorder %s109_s24, %s419_s7  ;;  %p428_p7 = scmp.lt.s32.totalorder %s419_s7, %s419_s7 }
  0x23   : > { %p422_p2 = pnand %p420_p1, %p408_p10  ;;  %p429_p6 = por %p428_p7, %p427_p4 }
  0x25   : > { %p423_p3 = pneg %p422_p2 }
  0x27   : > { %p430_p5 = pnand %p429_p6, %p423_p3 }
  0x29   : > { %433 = shalt.err (!%p430_p5)
}
  0x2a   : > { %s450_s8 = smov 128   ;;  %s451_s9 = smov 8  }
  0x2b   : > { %381 = dma.hbm_to_vmem [thread:$0]  (!%p503_p8), %s578_s2, 256, %s109_s24, [#allocation5], %s450_s8, %s450_s8, %s451_s9  }
  0x2c   : > { %p584_p9 = scmp.ne.s32.totalorder %s582_s25, 0 }
  0x2d   : > { %p585_p11 = scmp.eq.s32.totalorder (!%p584_p9), %s490_s23, 0 }
  0x2e   : > { %130 = sbr.rel (%p584_p9) target bundleno = 92 (0x5c), region = 28 }
  0x35   : > { %441 = dma.done.wait (%p585_p11), [#allocation5], 256   ;;  %p586_p10 = pmov %p585_p11 }
  0x36   : > { %p150_p5 = scmp.lt.s32.totalorder %s490_s23, 1  ;;  %s531_s12 = sshll.u32 %s490_s23, 7  ;;  %vm159_vm0 = vcmask 253952  }
  0x37   : > { %443 = vsyncadd (%p586_p10), [#allocation5], 4294967040  ;;  %s162_s13 = sld [smem:[#allocation3 + %s531_s12]]  ;;  %s170_s14 = sadd.s32 1, %s531_s12 }
  0x38   : > { %s588_s23 = smov (!%p150_p5, %s490_s23), 1  ;;  %s171_s15 = sld [smem:[#allocation3 + %s170_s14]] }
  0x39   : > { %s179_s16 = sadd.s32 2, %s531_s12  ;;  %s152_s19 = scalar_lea.vmem %s577_s1, %s588_s23 }
  0x3a   : > { %s357_s20 = sshll.u32 %s588_s23, 4  ;;  %s180_s25 = sld [smem:[#allocation3 + %s179_s16]]  ;;  %v158_v0 = vld [vmem:[%s152_s19] sm:$0x1] }
  0x3b   : > { %s543_s24 = scalar_lea.vmem %s579_s3, %s357_s20  ;;  %s188_s26 = sadd.s32 3, %s531_s12 }
  0x3c   : > { %s197_s27 = sadd.s32 4, %s531_s12  ;;  %160 = vst.msk [vmem:[%s543_s24] sm:$0x1] %vm159_vm0, %v158_v0  ;;  %s189_s28 = sld [smem:[#allocation3 + %s188_s26]] }
  0x3d   : > { %p163_p6 = scmp.gt.s32.totalorder %s162_s13, 0  ;;  %p315_p8 = scmp.lt.s32.totalorder %s162_s13, 15 }
  0x3e   : > { %s549_s29 = sld [smem:[#allocation3 + %s197_s27]]  ;;  %p172_p12 = scmp.gt.s32.totalorder %s171_s15, 0 }
  0x3f   : > { %s590_s13 = smov (!%p163_p6, %s162_s13), 0  ;;  %p320_p13 = scmp.lt.s32.totalorder %s171_s15, 15 }
  0x40   : > { %s592_s13 = smov (!%p315_p8, %s590_s13), 15  ;;  %s594_s15 = smov (!%p172_p12, %s171_s15), 0 }
  0x41   : > { %p181_p0 = scmp.gt.s32.totalorder %s180_s25, 0  ;;  %s167_s23 = scalar_lea.vmem [#allocation4], %s592_s13 }
  0x42   : > { %v168_v1 = vld [vmem:[%s167_s23] sm:$0x1]  ;;  %s596_s15 = smov (!%p320_p13, %s594_s15), 15  ;;  %p325_p1 = scmp.lt.s32.totalorder %s180_s25, 15 }
  0x43   : > { %169 = vst.msk [vmem:[%s543_s24 + $0x1] sm:$0x1] %vm159_vm0, %v168_v1  ;;  %s182_s30 = scalar_select %p181_p0, %s180_s25, 0 }
  0x44   : > { %s176_s4 = scalar_lea.vmem [#allocation4], %s596_s15  ;;  %p190_p2 = scmp.gt.s32.totalorder %s189_s28, 0 }
  0x45   : > { %v177_v2 = vld [vmem:[%s176_s4] sm:$0x1]  ;;  %p330_p3 = scmp.lt.s32.totalorder %s189_s28, 15  ;;  %s598_s30 = smov (!%p325_p1, %s182_s30), 15 }
  0x46   : > { %178 = vst.msk [vmem:[%s543_s24 + $0x2] sm:$0x1] %vm159_vm0, %v177_v2  ;;  %s600_s28 = smov (!%p190_p2, %s189_s28), 0  ;;  %p199_p4 = scmp.gt.s32.totalorder %s549_s29, 0 }
  0x47   : > { %s185_s5 = scalar_lea.vmem [#allocation4], %s598_s30  ;;  %s602_s28 = smov (!%p330_p3, %s600_s28), 15 }
  0x48   : > { %v186_v3 = vld [vmem:[%s185_s5] sm:$0x1]  ;;  %s200_s6 = scalar_select %p199_p4, %s549_s29, 0 }
  0x49   : > { %187 = vst.msk [vmem:[%s543_s24 + $0x3] sm:$0x1] %vm159_vm0, %v186_v3  ;;  %p335_p7 = scmp.lt.s32.totalorder %s549_s29, 15  ;;  %s194_s7 = scalar_lea.vmem [#allocation4], %s602_s28 }
  0x4a   : > { %v195_v4 = vld [vmem:[%s194_s7] sm:$0x1]  ;;  %s206_s8 = sadd.s32 5, %s531_s12  ;;  %s215_s9 = sadd.s32 6, %s531_s12 }
  0x4b   : > { %196 = vst.msk [vmem:[%s543_s24 + $0x4] sm:$0x1] %vm159_vm0, %v195_v4  ;;  %s604_s6 = smov (!%p335_p7, %s200_s6), 15  ;;  %s207_s10 = sld [smem:[#allocation3 + %s206_s8]] }
  0x4c   : > { %s216_s11 = sld [smem:[#allocation3 + %s215_s9]]  ;;  %s224_s13 = sadd.s32 7, %s531_s12 }
  0x4d   : > { %s203_s14 = scalar_lea.vmem [#allocation4], %s604_s6  ;;  %s225_s15 = sld [smem:[#allocation3 + %s224_s13]] }
  0x4e   : > { %v204_v5 = vld [vmem:[%s203_s14] sm:$0x1] }
  0x4f   : > { %205 = vst.msk [vmem:[%s543_s24 + $0x5] sm:$0x1] %vm159_vm0, %v204_v5 }
  0x51   : > { %p208_p9 = scmp.gt.s32.totalorder %s207_s10, 0  ;;  %p340_p11 = scmp.lt.s32.totalorder %s207_s10, 15 }
  0x52   : > { %p217_p10 = scmp.gt.s32.totalorder %s216_s11, 0  ;;  %p345_p5 = scmp.lt.s32.totalorder %s216_s11, 15 }
  0x53   : > { %s606_s10 = smov (!%p208_p9, %s207_s10), 0  ;;  %p226_p6 = scmp.gt.s32.totalorder %s225_s15, 0 }
  0x54   : > { %s608_s11 = smov (!%p217_p10, %s216_s11), 0  ;;  %s610_s10 = smov (!%p340_p11, %s606_s10), 15 }
  0x55   : > { %s612_s11 = smov (!%p345_p5, %s608_s11), 15  ;;  %s212_s16 = scalar_lea.vmem [#allocation4], %s610_s10 }
  0x56   : > { %v213_v6 = vld [vmem:[%s212_s16] sm:$0x1]  ;;  %p350_p8 = scmp.lt.s32.totalorder %s225_s15, 15  ;;  %s221_s12 = scalar_lea.vmem [#allocation4], %s612_s11 }
  0x57   : > { %214 = vst.msk [vmem:[%s543_s24 + $0x6] sm:$0x1] %vm159_vm0, %v213_v6  ;;  %v222_v7 = vld [vmem:[%s221_s12] sm:$0x1]  ;;  %s614_s15 = smov (!%p226_p6, %s225_s15), 0 }
  0x58   : > { %223 = vst.msk [vmem:[%s543_s24 + $0x7] sm:$0x1] %vm159_vm0, %v222_v7  ;;  %s616_s15 = smov (!%p350_p8, %s614_s15), 15 }
  0x59   : > { %s230_s17 = scalar_lea.vmem [#allocation4], %s616_s15 }
  0x5a   : > { %v231_v8 = vld [vmem:[%s230_s17] sm:$0x1] }
  0x5b   : > { %232 = vst.msk [vmem:[%s543_s24 + $0x8] sm:$0x1] %vm159_vm0, %v231_v8 }
  0x5c PF: > { %s18_s22 = sadd.s32 1, %s446_s22  }
  0x5d   : > { %p15_p12 = scmp.ge.s32.totalorder %s18_s22, 4  }
  0x5f   :  { %17 = sbr.rel (!%p15_p12) target bundleno = 13 (0xd), region = 71 }
  0x66   :  { %254 = vsyncpa [#allocation5], 1 }
  0x67   :  { %256 = vsyncpa [#allocation5 + $0x1], 1 }

</bundles_post_ra>
